<compile_context>
chip_gen: v6e
topology: v6e:2x2x1
jax: 0.10.0
libtpu: 0.0.40
codegen_flags: <defaults>
</compile_context>

<pallas_src>
import math
import functools

import numpy as np
import jax
import jax.numpy as jnp
from jax.experimental import pallas as pl
from jax.experimental.pallas import tpu as pltpu


def _round_up(x, m):
    return (x + m - 1) // m * m


# --------------------------- the Pallas kernel ---------------------------

def output_kernel(x_ref, w_ref, b_ref, o_ref):
    # x_ref: (block_m, Din)   w_ref: (Din, N_pad)   b_ref: (1, N_pad)
    logits = jnp.dot(x_ref[...], w_ref[...],
                     preferred_element_type=jnp.float32) + b_ref[...]
    # numerically-stable softmax over the last (lane) dimension, in f32
    m = jnp.max(logits, axis=-1, keepdims=True)
    p = jnp.exp(logits - m)
    denom = jnp.sum(p, axis=-1, keepdims=True)
    inv = pl.reciprocal(denom, approx=True)          # EUP, ~free VLIW slot
    o_ref[...] = (p * inv).astype(o_ref.dtype)


# ------------------------------ wrapper -----------------------------------

def output_forward(x, w, b, *, block_m=None):
    """softmax(x @ w + b, axis=-1).

    x: (..., decode_dim)   w: (decode_dim, target_dim)   b: (target_dim,)
    """
    *lead, d_in = x.shape
    assert w.shape[0] == d_in, "weight in-dim must match x last dim"
    n_out = w.shape[1]

    # ---- fold all leading dims into the matmul M dimension ----
    M = int(np.prod(lead)) if lead else 1
    x2d = x.reshape(M, d_in)

    # ---- lane-dense output: pad target_dim up to a multiple of 128 ----
    n_pad = _round_up(n_out, 128)
    if n_pad != n_out:
        w = jnp.pad(w, ((0, 0), (0, n_pad - n_out)))
        # padded vocab entries get a huge negative bias -> exp() underflows to 0
        b = jnp.pad(b, (0, n_pad - n_out), constant_values=-1e30)
    b2d = b.reshape(1, n_pad)

    # ---- pick an M tile (128/256-aligned when possible) and pad M ----
    if block_m is None:
        if M >= 256:
            block_m = 256
        elif M >= 128:
            block_m = 128
        else:
            block_m = _round_up(M, 8)
    m_pad = _round_up(M, block_m)
    if m_pad != M:
        x2d = jnp.pad(x2d, ((0, m_pad - M), (0, 0)))

    grid = (m_pad // block_m,)

    out2d = pl.pallas_call(
        output_kernel,
        out_shape=jax.ShapeDtypeStruct((m_pad, n_pad), x.dtype),
        grid=grid,
        in_specs=[
            pl.BlockSpec((block_m, d_in), lambda i: (i, 0)),   # activations: M-tiled
            pl.BlockSpec((d_in, n_pad), lambda i: (0, 0)),     # weight: resident
            pl.BlockSpec((1, n_pad), lambda i: (0, 0)),        # bias: resident
        ],
        out_specs=pl.BlockSpec((block_m, n_pad), lambda i: (i, 0)),
        compiler_params=pltpu.CompilerParams(
            dimension_semantics=("parallel",)),                # rows independent
    )(x2d, w, b2d)

    return out2d[:M, :n_out].reshape(*lead, n_out)


# --------------------------- parameter init -------------------------------

def init_params(key, decode_dim, target_dim):
    kw, kb = jax.random.split(key)
    w = jax.random.normal(kw, (decode_dim, target_dim), jnp.float32) / math.sqrt(decode_dim)
    b = jax.random.normal(kb, (target_dim,), jnp.float32) * 0.02
    return w, b


def reference(x, w, b):
    return jax.nn.softmax(jnp.einsum("...d,dn->...n", x, w) + b, axis=-1)


# ------------------------------- main --------------------------------------

if __name__ == "__main__":
    key = jax.random.PRNGKey(0)
    ok = True

    # config 1: lane-dense target_dim (multiple of 128)
    # config 2: ragged target_dim to exercise the padding path
    for (B, S, decode_dim, target_dim) in [(2, 8, 32, 128), (2, 8, 32, 100)]:
        kx, kp, key = jax.random.split(key, 3)
        x = jax.random.normal(kx, (B, S, decode_dim), jnp.float32)
        w, b = init_params(kp, decode_dim, target_dim)

        out = output_forward(x, w, b)
        jax.block_until_ready(out)

        assert out.shape == (B, S, target_dim)
        ref = reference(x, w, b)
        if not np.allclose(np.asarray(out), np.asarray(ref), atol=1e-2, rtol=1e-2):
            ok = False

    if ok:
        print("KERNEL_OK")
</pallas_src>

<mosaic_0001>
module attributes {stable_mosaic.version = 11 : i64} {
  func.func @output_kernel(%arg0: i32, %arg1: memref<16x32xf32, #tpu.memory_space<vmem>>, %arg2: memref<32x128xf32, #tpu.memory_space<vmem>>, %arg3: memref<1x128xf32, #tpu.memory_space<vmem>>, %arg4: memref<16x128xf32, #tpu.memory_space<vmem>>) attributes {dimension_semantics = [#tpu.dimension_semantics<parallel>], iteration_bounds = array<i64: 1>, scalar_prefetch = 0 : i64, scratch_operands = 0 : i64, tpu.core_type = #tpu.core_type<tc>, window_params = [{transform_indices = @transform_0, window_bounds = array<i64: 16, 32>}, {pipeline_mode = #tpu.pipeline_mode<synchronous>, transform_indices = @transform_1, window_bounds = array<i64: 32, 128>}, {pipeline_mode = #tpu.pipeline_mode<synchronous>, transform_indices = @transform_2, window_bounds = array<i64: 1, 128>}, {transform_indices = @transform_3, window_bounds = array<i64: 16, 128>}]} {
    %c0 = arith.constant 0 : index
    %c0_0 = arith.constant 0 : index
    %0 = vector.load %arg1[%c0, %c0_0] : memref<16x32xf32, #tpu.memory_space<vmem>>, vector<16x32xf32>
    %c0_1 = arith.constant 0 : index
    %c0_2 = arith.constant 0 : index
    %1 = vector.load %arg2[%c0_1, %c0_2] : memref<32x128xf32, #tpu.memory_space<vmem>>, vector<32x128xf32>
    %cst = arith.constant dense<0.000000e+00> : vector<16x128xf32>
    %2 = tpu.matmul %0, %1, %cst {dimension_numbers = #tpu.dot_dimension_numbers<[1], [0], [0], [1], [0, 0, 1, 1], [], []>} : vector<16x32xf32>, vector<32x128xf32>, vector<16x128xf32> -> vector<16x128xf32>
    %c0_3 = arith.constant 0 : index
    %c0_4 = arith.constant 0 : index
    %3 = vector.load %arg3[%c0_3, %c0_4] : memref<1x128xf32, #tpu.memory_space<vmem>>, vector<1x128xf32>
    %4 = vector.broadcast %3 : vector<1x128xf32> to vector<16x128xf32>
    %5 = arith.addf %2, %4 : vector<16x128xf32>
    %cst_5 = arith.constant dense<0xFF800000> : vector<16xf32>
    %6 = vector.multi_reduction <maximumf>, %5, %cst_5 [1] : vector<16x128xf32> to vector<16xf32>
    %7 = vector.shape_cast %6 : vector<16xf32> to vector<16x1xf32>
    %8 = vector.broadcast %7 : vector<16x1xf32> to vector<16x128xf32>
    %9 = arith.subf %5, %8 : vector<16x128xf32>
    %10 = math.exp %9 : vector<16x128xf32>
    %cst_6 = arith.constant dense<0.000000e+00> : vector<16xf32>
    %11 = vector.multi_reduction <add>, %10, %cst_6 [1] : vector<16x128xf32> to vector<16xf32>
    %12 = vector.shape_cast %11 : vector<16xf32> to vector<16x1xf32>
    %13 = tpu.reciprocal %12 {approx = true} : vector<16x1xf32> -> vector<16x1xf32>
    %14 = vector.broadcast %13 : vector<16x1xf32> to vector<16x128xf32>
    %15 = arith.mulf %10, %14 : vector<16x128xf32>
    %c0_7 = arith.constant 0 : index
    %c0_8 = arith.constant 0 : index
    %16 = vector.load %arg4[%c0_7, %c0_8] : memref<16x128xf32, #tpu.memory_space<vmem>>, vector<16x128xf32>
    tpu.vector_store %arg4[%c0_7, %c0_8], %15 {strides = array<i32>} : memref<16x128xf32, #tpu.memory_space<vmem>>, vector<16x128xf32>,
    return
  }
  func.func @transform_0(%arg0: i32) -> (i32, i32) {
    %c0_i32 = arith.constant 0 : i32
    %c0_i32_0 = arith.constant 0 : i32
    return %arg0, %c0_i32 : i32, i32
  }
  func.func @transform_1(%arg0: i32) -> (i32, i32) {
    %c0_i32 = arith.constant 0 : i32
    %c0_i32_0 = arith.constant 0 : i32
    %c0_i32_1 = arith.constant 0 : i32
    return %c0_i32, %c0_i32_0 : i32, i32
  }
  func.func @transform_2(%arg0: i32) -> (i32, i32) {
    %c0_i32 = arith.constant 0 : i32
    %c0_i32_0 = arith.constant 0 : i32
    %c0_i32_1 = arith.constant 0 : i32
    return %c0_i32, %c0_i32_0 : i32, i32
  }
  func.func @transform_3(%arg0: i32) -> (i32, i32) {
    %c0_i32 = arith.constant 0 : i32
    %c0_i32_0 = arith.constant 0 : i32
    return %arg0, %c0_i32 : i32, i32
  }
}

</mosaic_0001>

<bundles_post_ra>
// kernel: tpu_custom_call.1
= control target key start
LH: loop header
LB: loop body
LE: loop exit
PB: predicated region body
PF: predicated region fallthrough
CT: control target
= control target key end

     0   :  { %8 = vsyncpa [#allocation3], 0  ;;  %s323_s0 = inlined_call_operand.hbm [shape: f32[16,32], index: 0, kind: input, shape index: {}]   ;;  %s324_s1 = inlined_call_operand.hbm [shape: f32[32,128], index: 1, kind: input, shape index: {}]   ;;  %s325_s2 = inlined_call_operand.vmem [shape: f32[1,128], index: 2, kind: input, shape index: {}]   ;;  %s326_s3 = inlined_call_operand.hbm [shape: f32[16,128], index: 3, kind: output, shape index: {}]  }
   0x1   :  { %9 = vsyncpa [#allocation6], 0 }
   0x2   :  { %10 = vsyncpa [#allocation4], 0  ;;  %s275_s12 = smov [#allocation2]  }
   0x3   :  { %s16_s13 = sshll.u32 %s275_s12, 4  ;;  %s17_s13 = int_to_ptr.vmem [resolvable:$true] %s16_s13 }
   0x4   :  { %s217_s14 = scalar_lea.vmem %s17_s13, 256  ;;  %p222_p1 = scmp.lt.s32.totalorder %s17_s13, %s17_s13 }
   0x5   :  { %p218_p0 = scmp.ne.s32.totalorder %s17_s13, %s217_s14  ;;  %p223_p2 = scmp.lt.s32.totalorder %s217_s14, %s217_s14 }
   0x7   :  { %p224_p3 = por %p223_p2, %p222_p1 }
   0x9   :  { %p225_p4 = pnand %p224_p3, %p218_p0 }
   0xb   :  { %228 = shalt.err (!%p225_p4)
}
   0xc   :  { %s276_s15 = smov 128   ;;  %s277_s16 = smov 8  }
   0xd   :  { %22 = dma.hbm_to_vmem [thread:$0]  %s323_s0, 256, %s17_s13, [#allocation3], %s276_s15, %s276_s15, %s277_s16  }
   0xe   :  { %s278_s19 = smov [#allocation5]  }
   0xf   :  { %s28_s20 = sshll.u32 %s278_s19, 4  ;;  %s29_s20 = int_to_ptr.vmem [resolvable:$true] %s28_s20 }
  0x10   :  { %s237_s21 = scalar_lea.vmem %s29_s20, 512  ;;  %p242_p6 = scmp.lt.s32.totalorder %s29_s20, %s29_s20 }
  0x11   :  { %p238_p5 = scmp.ne.s32.totalorder %s29_s20, %s237_s21  ;;  %p243_p7 = scmp.lt.s32.totalorder %s237_s21, %s237_s21 }
  0x13   :  { %p244_p8 = por %p243_p7, %p242_p6 }
  0x15   :  { %p245_p9 = pnand %p244_p8, %p238_p5 }
  0x17   :  { %248 = shalt.err (!%p245_p9)
}
  0x18   :  { %34 = dma.hbm_to_vmem [thread:$0]  %s324_s1, 512, %s29_s20, [#allocation6], %s276_s15, %s276_s15, %s277_s16  }
  0x19   :  { %269 = dma.done.wait [#allocation3], 256  }
  0x1a   :  { %270 = vsyncadd [#allocation3], 4294967040 }
  0x1b   :  { %271 = dma.done.wait [#allocation6], 512  }
  0x1c   :  { %272 = vsyncadd [#allocation6], 4294966784  ;;  %vm56_vm0 = vcmask 261120   ;;  %v48_v0 = vld [vmem:[#allocation5 + $0x18] sm:$0xff]  ;;  %v47_v1 = vld [vmem:[#allocation5 + $0x10] sm:$0xff] }
  0x1d   :  { %185 = vmatprep.subr.mxu0 %v48_v0  ;;  %v43_v2 = vld [vmem:[#allocation2] sm:$0xff]  ;;  %v46_v3 = vld [vmem:[#allocation5 + $0x8] sm:$0xff]  ;;  %v45_v4 = vld [vmem:[#allocation5] sm:$0xff] }
  0x1e   :  { %186 = vmatpush3.msra.mxu0 %v48_v0  ;;  %193 = vmatprep.mubr.msk.f32.mxu0 %vm56_vm0, %v43_v2  ;;  %v44_v5 = vld [vmem:[#allocation2 + $0x8] sm:$0xff]  ;;  %v176_v7 = vld [vmem:[%s325_s2] ss:$0 sm:$0xff]  ;;  %s279_s2 = smov [#allocation7]  }
  0x1f   :  { %187 = vmatprep.subr.mxu0 %v47_v1  ;;  %s163_s24 = sshll.u32 %s279_s2, 4  ;;  %s164_s24 = int_to_ptr.vmem [resolvable:$true] %s163_s24 }
  0x20   :  { %188 = vmatpush3.msra.mxu0 %v47_v1  ;;  %s249_s25 = scalar_lea.vmem %s164_s24, 256  ;;  %p254_p11 = scmp.lt.s32.totalorder %s164_s24, %s164_s24 }
  0x21   :  { %189 = vmatprep.subr.mxu0 %v46_v3  ;;  %p250_p10 = scmp.ne.s32.totalorder %s164_s24, %s249_s25  ;;  %p255_p12 = scmp.lt.s32.totalorder %s249_s25, %s249_s25 }
  0x22   :  { %190 = vmatpush3.msra.mxu0 %v46_v3 }
  0x23   :  { %191 = vmatprep.subr.mxu0 %v45_v4  ;;  %p256_p13 = por %p255_p12, %p254_p11 }
  0x24   :  { %192 = vmatpush3.msra.mxu0 %v45_v4 }
  0x25   :  { %194 = vmatmul.mubr.msk.f32.vlgmr.msra.gmra.mxu0 %vm56_vm0, %v44_v5  ;;  %p257_p0 = pnand %p256_p13, %p250_p10 }
  0xe5   :  { %v195_v6 = vpop.f32.mrf.mxu0 }
  0xe6   :  { %v135_v10 = vadd.f32 %v195_v6, %v176_v7 }
  0xe7   :  { %v129_v8 = vpop.f32.mrf.mxu0 }
  0xe8   :  { %v130_v9 = vadd.f32 %v176_v7, %v129_v8 }
  0xea   :  { %138 = vmax.xlane.f32.xlu0 %v130_v9 }
  0xee   :  { %140 = vmax.xlane.f32.xlu0 %v135_v10 }
 0x173   :  { %v139_v11 = vpop.xlane.xlu0 %138 }
 0x174   :  { %v142_v12 = vsub.f32 %v130_v9, %v139_v11 }
 0x176   :  { %v144_v13 = vmul.f32 1.442695, %v142_v12 }
 0x177   :  { %v141_v14 = vpop.xlane.xlu0 %140 }
 0x178   :  { %201 = vpow2.f32 %v144_v13  ;;  %v143_v15 = vsub.f32 %v135_v10, %v141_v14 }
 0x17a   :  { %v146_v16 = vmul.f32 1.442695, %v143_v15 }
 0x17c   :  { %203 = vpow2.f32 %v146_v16 }
 0x185   :  { %v202_v17 = vpop.eup %201 }
 0x186   :  { %148 = vadd.xlane.f32.xlu1 %v202_v17 }
 0x189   :  { %v204_v18 = vpop.eup %203 }
 0x18a   :  { %150 = vadd.xlane.f32.xlu1 %v204_v18 }
 0x20f   :  { %v149_v19 = vpop.xlane.xlu1 %148 }
 0x210   :  { %205 = vrcp.f32 %v149_v19 }
 0x213   :  { %v151_v20 = vpop.xlane.xlu1 %150 }
 0x214   :  { %207 = vrcp.f32 %v151_v20 }
 0x21d   :  { %v206_v21 = vpop.eup %205 }
 0x21e   :  { %v154_v22 = vmul.f32 %v206_v21, %v202_v17 }
 0x220   :  { %156 = vst [vmem:[#allocation7] sm:$0xff] %v154_v22 }
 0x221   :  { %v208_v23 = vpop.eup %207 }
 0x222   :  { %v155_v24 = vmul.f32 %v208_v23, %v204_v18 }
 0x224   :  { %157 = vst [vmem:[#allocation7 + $0x8] sm:$0xff] %v155_v24 }
 0x225   :  { %260 = shalt.err (!%p257_p0)
}
 0x226   :  { %169 = dma.vmem_to_hbm [thread:$0]  %s164_s24, 256, %s326_s3, [#allocation4], %s276_s15, %s276_s15, %s277_s16  }
 0x227   :  { %273 = dma.done.wait [#allocation4], 256  }
 0x228   :  { %274 = vsyncadd [#allocation4], 4294967040 }
 0x229   :  { %173 = vsyncpa [#allocation3], 1 }
 0x22a   :  { %174 = vsyncpa [#allocation6], 1 }
 0x22b   :  { %175 = vsyncpa [#allocation4], 1 }

</bundles_post_ra>
